<compile_context>
chip_gen: v6e
topology: v6e:2x2x1
jax: 0.10.0
libtpu: 0.0.40
codegen_flags: <defaults>
</compile_context>

<pallas_src>
import jax
import jax.numpy as jnp
from jax.experimental import pallas as pl
from jax.experimental.pallas import tpu as pltpu

BN_EPS = 1e-5
_LANE = 128


def _tpu_vmem_capacity_bytes():
    """Physical VMEM per core; conservative 64 MiB fallback (v7x)."""
    try:
        info = pltpu.get_tpu_info()
        cap = getattr(info, "vmem_capacity_bytes", None)
        if cap:
            return int(cap)
    except Exception:
        pass
    return 64 * 1024 * 1024


def _vmem_limit(peak_bytes, cap):
    # 25% headroom, floor at 32 MiB, stay below physical VMEM.
    return int(min(max(peak_bytes * 5 // 4, 32 * 1024 * 1024), cap * 57 // 64))


def _conv_bn_sigmoid(w, b, pooled_sum):
    """sigmoid(W' @ pooled_sum + b') with W'/b' = BN- and 1/HW-folded conv."""
    c_in = w.shape[1]
    if c_in >= 512:
        # Large channel count: MXU matmul is worthwhile.
        y = jnp.dot(w, pooled_sum[:, None], preferred_element_type=jnp.float32)
    else:
        # Single-output-column matvec: keep it on the VPU/XLU
        # (broadcast-multiply + lane reduce) instead of 1/256 MXU utilization.
        y = jnp.sum(w * pooled_sum[None, :], axis=-1, keepdims=True)
    return jax.nn.sigmoid(y + b)


# ----------------------------------------------------------------------------
# Fused single-pass kernel: one (C, HW) slab per grid step (1 read + 1 write).
# ----------------------------------------------------------------------------
def _fused_kernel(x_ref, w_ref, b_ref, o_ref):
    # x_ref: (1, C, HW)  one batch element (x's native dtype)
    # w_ref: (C, C)      1x1 conv weight with BN scale and 1/HW folded in (f32)
    # b_ref: (C, 1)      folded BN bias (f32)
    x = x_ref[0]                                              # (C, HW)
    pooled = jnp.sum(x, axis=-1, dtype=jnp.float32)           # (C,) == HW * avg
    attn = _conv_bn_sigmoid(w_ref[...], b_ref[...], pooled)   # (C, 1) f32
    o_ref[0] = (x * attn.astype(x.dtype)).astype(o_ref.dtype)


def _attention_refinement_fused(x, w_fold, b_fold, vmem_cap):
    N, C, HW = x.shape
    itemsize = jnp.dtype(x.dtype).itemsize
    # x + out double-buffered, folded W double-buffered, (C,C) matvec temp.
    peak = 4 * C * HW * itemsize + 3 * C * C * 4 + 64 * 1024
    return pl.pallas_call(
        _fused_kernel,
        out_shape=jax.ShapeDtypeStruct((N, C, HW), x.dtype),
        grid_spec=pltpu.PrefetchScalarGridSpec(
            num_scalar_prefetch=0,
            grid=(N,),
            in_specs=[
                pl.BlockSpec((1, C, HW), lambda n: (n, 0, 0)),  # x slab
                pl.BlockSpec((C, C), lambda n: (0, 0)),         # folded W
                pl.BlockSpec((C, 1), lambda n: (0, 0)),         # folded b
            ],
            out_specs=pl.BlockSpec((1, C, HW), lambda n: (n, 0, 0)),
        ),
        compiler_params=pltpu.CompilerParams(
            dimension_semantics=("parallel",),
            vmem_limit_bytes=_vmem_limit(peak, vmem_cap)),
    )(x, w_fold, b_fold)


# ----------------------------------------------------------------------------
# Two-pass fallback (for slabs that don't fit VMEM, esp. v7x's 64 MiB):
#   pass 1: tiled pooled-sum over HW (ragged tail masked in-kernel)
#   wrapper: attn = sigmoid(pooled @ W'.T + b') as a plain XLA matmul
#   pass 2: tiled channel-wise re-scale x * attn.
# ----------------------------------------------------------------------------
def _make_pooled_sum_kernel(hw, tile_hw):
    ragged = (hw % tile_hw) != 0

    def kernel(x_ref, pooled_ref):
        t = pl.program_id(1)

        @pl.when(t == 0)
        def _():
            pooled_ref[...] = jnp.zeros_like(pooled_ref)

        x = x_ref[0]                                          # (C, tile_hw)
        if ragged:
            col = jax.lax.broadcasted_iota(jnp.int32, x.shape, 1)
            x = jnp.where(t * tile_hw + col < hw, x, jnp.zeros_like(x))
        pooled_ref[0] += jnp.sum(x, axis=-1, keepdims=True, dtype=jnp.float32)

    return kernel


def _scale_kernel(x_ref, attn_ref, o_ref):
    x = x_ref[0]                                              # (C, tile_hw)
    attn = attn_ref[0].astype(x.dtype)                        # (C, 1)
    o_ref[0] = (x * attn).astype(o_ref.dtype)


def _attention_refinement_two_pass(x, w_fold, b_fold, tile_hw, vmem_cap):
    N, C, HW = x.shape
    T = pl.cdiv(HW, tile_hw)
    itemsize = jnp.dtype(x.dtype).itemsize
    tile_bytes = C * tile_hw * itemsize

    pooled = pl.pallas_call(
        _make_pooled_sum_kernel(HW, tile_hw),
        out_shape=jax.ShapeDtypeStruct((N, C, 1), jnp.float32),
        grid_spec=pltpu.PrefetchScalarGridSpec(
            num_scalar_prefetch=0,
            grid=(N, T),
            in_specs=[pl.BlockSpec((1, C, tile_hw), lambda n, t: (n, 0, t))],
            out_specs=pl.BlockSpec((1, C, 1), lambda n, t: (n, 0, 0)),
        ),
        compiler_params=pltpu.CompilerParams(
            dimension_semantics=("parallel", "arbitrary"),
            vmem_limit_bytes=_vmem_limit(3 * tile_bytes, vmem_cap)),
    )(x)

    # Tiny (N, C) x (C, C) conv+BN+sigmoid: plain XLA (real MXU utilization),
    # keeps the (C, C) weight out of the hot kernels' VMEM.
    attn = jax.nn.sigmoid(
        jnp.einsum("nc,oc->no", pooled[:, :, 0], w_fold)
        + b_fold[:, 0][None, :])[:, :, None]                  # (N, C, 1) f32

    out = pl.pallas_call(
        _scale_kernel,
        out_shape=jax.ShapeDtypeStruct((N, C, HW), x.dtype),
        grid_spec=pltpu.PrefetchScalarGridSpec(
            num_scalar_prefetch=0,
            grid=(N, T),
            in_specs=[
                pl.BlockSpec((1, C, tile_hw), lambda n, t: (n, 0, t)),
                pl.BlockSpec((1, C, 1), lambda n, t: (n, 0, 0)),
            ],
            out_specs=pl.BlockSpec((1, C, tile_hw), lambda n, t: (n, 0, t)),
        ),
        compiler_params=pltpu.CompilerParams(
            dimension_semantics=("parallel", "parallel"),
            vmem_limit_bytes=_vmem_limit(5 * tile_bytes, vmem_cap)),
    )(x, attn)
    return out


# ----------------------------------------------------------------------------
# Wrapper
# ----------------------------------------------------------------------------
def attention_refinement(x_nchw, w, gamma, beta, running_mean, running_var,
                         *, vmem_budget_bytes=None,
                         force_two_pass=False, two_pass_tile_hw=None):
    """x_nchw: (N, C, H, W).  Returns (N, C, H, W)."""
    N, C, H, W = x_nchw.shape
    c_out, c_in = w.shape
    assert c_out == c_in == C, (
        "channel-attention broadcast requires out_planes == in_planes == C")

    # Fold BatchNorm (inference stats) and the 1/HW of the average pool into
    # the 1x1 conv: y = W' @ sum_hw(x) + b'.
    inv_std = jax.lax.rsqrt(running_var.astype(jnp.float32) + BN_EPS)
    scale = gamma.astype(jnp.float32) * inv_std                        # (C,)
    w_fold = (scale[:, None] * w.astype(jnp.float32)) / float(H * W)   # (C, C)
    b_fold = (beta.astype(jnp.float32)
              - running_mean.astype(jnp.float32) * scale)[:, None]     # (C, 1)

    HW = H * W
    x = x_nchw.reshape(N, C, HW)
    itemsize = jnp.dtype(x_nchw.dtype).itemsize

    cap = _tpu_vmem_capacity_bytes()
    budget = (vmem_budget_bytes if vmem_budget_bytes is not None
              else cap * 13 // 16)   # ~104 MiB on v5e/v6e, ~52 MiB on v7x

    # Fused-path VMEM footprint: x + out double-buffered, folded W
    # double-buffered, (C, C) matvec broadcast temporary.
    fused_peak = 4 * C * HW * itemsize + 3 * C * C * 4 + 64 * 1024
    use_two_pass = (force_two_pass or fused_peak > budget) and HW >= _LANE

    if not use_two_pass:
        out = _attention_refinement_fused(x, w_fold, b_fold, cap)
    else:
        if two_pass_tile_hw is None:
            # Scale pass dominates VMEM: ~4 x (C, tile) live (x + out, 2-buf).
            fit_tile = (budget // (5 * C * itemsize)) // _LANE * _LANE
            min_tile = 512 if itemsize < 4 else 256   # keep DMA rows >= 512 B
            tile_hw = max(fit_tile, min_tile)
        else:
            tile_hw = max(_LANE, (int(two_pass_tile_hw) // _LANE) * _LANE)
        # Never exceed HW rounded down to a lane multiple (block <= array dim);
        # any ragged tail is masked inside the reduce kernel.
        tile_hw = max(_LANE, min(tile_hw, (HW // _LANE) * _LANE))
        out = _attention_refinement_two_pass(x, w_fold, b_fold, tile_hw, cap)

    return out.reshape(N, C, H, W)


def attention_refinement_ref(x_nchw, w, gamma, beta, running_mean, running_var):
    """Pure-JAX reference (unfused math) for correctness checking."""
    pooled = jnp.mean(x_nchw.astype(jnp.float32), axis=(2, 3))          # (N, C)
    y = pooled @ w.astype(jnp.float32).T                                # (N, C)
    bn = (y - running_mean) / jnp.sqrt(running_var + BN_EPS) * gamma + beta
    attn = jax.nn.sigmoid(bn)[:, :, None, None]
    return (x_nchw * attn).astype(x_nchw.dtype)


if __name__ == "__main__":
    # Small shapes: batch=2, in_planes=out_planes=4, spatial=16x16.
    N, C, H, W = 2, 4, 16, 16

    key = jax.random.PRNGKey(0)
    kx, kw = jax.random.split(key)

    x = jax.random.normal(kx, (N, C, H, W), dtype=jnp.float32)

    # Deterministic synthetic parameters (non-trivial BN stats to test the fold).
    w = 0.1 * jax.random.normal(kw, (C, C), dtype=jnp.float32)   # 1x1 conv weight
    gamma = 1.0 + 0.1 * jnp.arange(C, dtype=jnp.float32)         # BN weight
    beta = 0.05 * jnp.arange(C, dtype=jnp.float32)               # BN bias
    running_mean = 0.01 * jnp.arange(C, dtype=jnp.float32)
    running_var = 1.0 + 0.02 * jnp.arange(C, dtype=jnp.float32)

    ref = attention_refinement_ref(x, w, gamma, beta, running_mean, running_var)

    # Fused single-pass path.
    out = attention_refinement(x, w, gamma, beta, running_mean, running_var)
    out = jax.block_until_ready(out)
    assert out.shape == (N, C, H, W)
    assert jnp.allclose(out, ref, atol=1e-5, rtol=1e-5), "fused path mismatch"

    # Two-pass (reduce -> wrapper conv+sigmoid -> scale) fallback path.
    out2 = attention_refinement(x, w, gamma, beta, running_mean, running_var,
                                force_two_pass=True, two_pass_tile_hw=128)
    out2 = jax.block_until_ready(out2)
    assert jnp.allclose(out2, ref, atol=1e-5, rtol=1e-5), "two-pass mismatch"

    # Ragged spatial size (14x14 -> HW=196, not a multiple of 128): exercises
    # masked tail stores on the fused path and in-kernel tail masking on the
    # two-pass path, with no wrapper-side padding.
    Hr = Wr = 14
    xr = jax.random.normal(jax.random.PRNGKey(1), (1, C, Hr, Wr),
                           dtype=jnp.float32)
    refr = attention_refinement_ref(xr, w, gamma, beta, running_mean,
                                    running_var)
    outr = attention_refinement(xr, w, gamma, beta, running_mean, running_var)
    outr = jax.block_until_ready(outr)
    assert jnp.allclose(outr, refr, atol=1e-5, rtol=1e-5), "ragged fused mismatch"
    outr2 = attention_refinement(xr, w, gamma, beta, running_mean, running_var,
                                 force_two_pass=True, two_pass_tile_hw=128)
    outr2 = jax.block_until_ready(outr2)
    assert jnp.allclose(outr2, refr, atol=1e-5, rtol=1e-5), "ragged two-pass mismatch"

    print("KERNEL_OK")
</pallas_src>

<mosaic_0001>
module attributes {stable_mosaic.version = 11 : i64} {
  func.func @_fused_kernel(%arg0: i32, %arg1: memref<1x4x256xf32, #tpu.memory_space<vmem>>, %arg2: memref<4x4xf32, #tpu.memory_space<vmem>>, %arg3: memref<4x1xf32, #tpu.memory_space<vmem>>, %arg4: memref<1x4x256xf32, #tpu.memory_space<vmem>>) attributes {dimension_semantics = [#tpu.dimension_semantics<parallel>], iteration_bounds = array<i64: 2>, scalar_prefetch = 0 : i64, scratch_operands = 0 : i64, tpu.core_type = #tpu.core_type<tc>, window_params = [{transform_indices = @transform_0, window_bounds = array<i64: 1, 4, 256>}, {pipeline_mode = #tpu.pipeline_mode<synchronous>, transform_indices = @transform_1, window_bounds = array<i64: 4, 4>}, {pipeline_mode = #tpu.pipeline_mode<synchronous>, transform_indices = @transform_2, window_bounds = array<i64: 4, 1>}, {transform_indices = @transform_3, window_bounds = array<i64: 1, 4, 256>}]} {
    %c0 = arith.constant 0 : index
    %c0_0 = arith.constant 0 : index
    %c0_1 = arith.constant 0 : index
    %0 = vector.load %arg1[%c0, %c0_0, %c0_1] : memref<1x4x256xf32, #tpu.memory_space<vmem>>, vector<1x4x256xf32>
    %1 = vector.shape_cast %0 : vector<1x4x256xf32> to vector<4x256xf32>
    %cst = arith.constant dense<0.000000e+00> : vector<4xf32>
    %2 = vector.multi_reduction <add>, %1, %cst [1] : vector<4x256xf32> to vector<4xf32>
    %c0_2 = arith.constant 0 : index
    %c0_3 = arith.constant 0 : index
    %3 = vector.load %arg2[%c0_2, %c0_3] : memref<4x4xf32, #tpu.memory_space<vmem>>, vector<4x4xf32>
    %c0_4 = arith.constant 0 : index
    %c0_5 = arith.constant 0 : index
    %4 = vector.load %arg3[%c0_4, %c0_5] : memref<4x1xf32, #tpu.memory_space<vmem>>, vector<4x1xf32>
    %5 = vector.shape_cast %2 : vector<4xf32> to vector<1x4xf32>
    %6 = vector.broadcast %5 : vector<1x4xf32> to vector<4x4xf32>
    %7 = arith.mulf %3, %6 : vector<4x4xf32>
    %cst_6 = arith.constant dense<0.000000e+00> : vector<4xf32>
    %8 = vector.multi_reduction <add>, %7, %cst_6 [1] : vector<4x4xf32> to vector<4xf32>
    %9 = vector.shape_cast %8 : vector<4xf32> to vector<4x1xf32>
    %10 = arith.addf %9, %4 : vector<4x1xf32>
    %11 = arith.negf %10 : vector<4x1xf32>
    %12 = math.exp %11 : vector<4x1xf32>
    %cst_7 = arith.constant 1.000000e+00 : f32
    %13 = vector.broadcast %cst_7 : f32 to vector<4x1xf32>
    %14 = arith.addf %13, %12 : vector<4x1xf32>
    %15 = arith.divf %13, %14 : vector<4x1xf32>
    %16 = vector.broadcast %15 : vector<4x1xf32> to vector<4x256xf32>
    %17 = arith.mulf %1, %16 : vector<4x256xf32>
    %c0_8 = arith.constant 0 : index
    %c0_9 = arith.constant 0 : index
    %c0_10 = arith.constant 0 : index
    %18 = vector.load %arg4[%c0_8, %c0_9, %c0_10] : memref<1x4x256xf32, #tpu.memory_space<vmem>>, vector<1x4x256xf32>
    %19 = vector.shape_cast %18 : vector<1x4x256xf32> to vector<4x256xf32>
    %20 = vector.shape_cast %17 : vector<4x256xf32> to vector<1x4x256xf32>
    tpu.vector_store %arg4[%c0_8, %c0_9, %c0_10], %20 {strides = array<i32>} : memref<1x4x256xf32, #tpu.memory_space<vmem>>, vector<1x4x256xf32>,
    return
  }
  func.func @transform_0(%arg0: i32) -> (i32, i32, i32) {
    %c0_i32 = arith.constant 0 : i32
    %c0_i32_0 = arith.constant 0 : i32
    %c0_i32_1 = arith.constant 0 : i32
    return %arg0, %c0_i32, %c0_i32_0 : i32, i32, i32
  }
  func.func @transform_1(%arg0: i32) -> (i32, i32) {
    %c0_i32 = arith.constant 0 : i32
    %c0_i32_0 = arith.constant 0 : i32
    %c0_i32_1 = arith.constant 0 : i32
    return %c0_i32, %c0_i32_0 : i32, i32
  }
  func.func @transform_2(%arg0: i32) -> (i32, i32) {
    %c0_i32 = arith.constant 0 : i32
    %c0_i32_0 = arith.constant 0 : i32
    %c0_i32_1 = arith.constant 0 : i32
    return %c0_i32, %c0_i32_0 : i32, i32
  }
  func.func @transform_3(%arg0: i32) -> (i32, i32, i32) {
    %c0_i32 = arith.constant 0 : i32
    %c0_i32_0 = arith.constant 0 : i32
    %c0_i32_1 = arith.constant 0 : i32
    return %arg0, %c0_i32, %c0_i32_0 : i32, i32, i32
  }
}

</mosaic_0001>

<bundles_post_ra>
// kernel: tpu_custom_call.1
= control target key start
LH: loop header
LB: loop body
LE: loop exit
PB: predicated region body
PF: predicated region fallthrough
CT: control target
= control target key end

     0   :  { %8 = vsyncpa [#allocation3], 0  ;;  %s663_s0 = inlined_call_operand.hbm [shape: f32[2,4,256], index: 0, kind: input, shape index: {}]   ;;  %s664_s1 = inlined_call_operand.vmem [shape: f32[4,4], index: 1, kind: input, shape index: {}]   ;;  %s665_s2 = inlined_call_operand.vmem [shape: f32[4,1], index: 2, kind: input, shape index: {}]   ;;  %s666_s3 = inlined_call_operand.hbm [shape: f32[2,4,256], index: 3, kind: output, shape index: {}]  }
   0x1   :  { %10 = vsyncpa [#allocation3 + $0x1], 0 }
   0x2   :  { %11 = vsyncpa [#allocation4], 0 }
   0x3   :  { %13 = vsyncpa [#allocation4 + $0x1], 0  ;;  %s512_s12 = smov 0   ;;  %s514_s13 = smov 0  }
   0x4   :  { %s516_s14 = smov 0   ;;  %s518_s15 = smov 0  }
   0x5 LB: > { %s533_s16 = sadd.s32 4294967295, %s486_s15   ;;  %s322_s17 = sadd.s32 4294967294, %s486_s15   ;;  %s486_s15 = sphi %s518_s15, %s683_s15   ;;  %s482_s14 = sphi %s516_s14, %s682_s14   ;;  %s478_s13 = sphi %s514_s13, %s681_s13   ;;  %s474_s12 = sphi %s512_s12, %s680_s12  }
   0x6   : > { %s537_s18 = sadd.s32 1, %s486_s15   ;;  %s26_s19 = sadd.s32 1, %s482_s14 }
   0x7   : > { %s23_s20 = ssub.s32 %s486_s15, %s537_s18  ;;  %p33_p0 = scmp.ne.s32.totalorder %s482_s14, %s478_s13 }
   0x8   : > { %p24_p1 = scmp.eq.s32.totalorder %s23_s20, 0  ;;  %p34_p2 = scmp.eq.s32.totalorder %s486_s15, 0 }
   0x9   : > { %p39_p3 = scmp.ne.s32.totalorder %s478_s13, %s474_s12  ;;  %p40_p4 = scmp.eq.s32.totalorder %s533_s16, 0 }
   0xa   : > { %s549_s21 = scalar_select %p24_p1, %s482_s14, %s26_s19  }
   0xb   : > { %p551_p5 = por %p34_p2, %p33_p0  ;;  %p555_p6 = por %p40_p4, %p39_p3 }
   0xc   : > { %p105_p7 = scmp.eq.s32.totalorder %s533_s16, 1  ;;  %p111_p8 = scmp.eq.s32.totalorder %s322_s17, 1 }
   0xd   : > { %s670_s23 = scalar_select %p555_p6, 1, 0 }
   0xe   : > { %p351_p10 = scmp.lt.s32.totalorder %s486_s15, 2  ;;  %p562_p11 = por %p105_p7, %p33_p0 }
   0xf   : > { %p566_p12 = por %p111_p8, %p39_p3  ;;  %s137_s26 = sand.u32 1, %s482_s14  }
  0x10   : > { %s671_s24 = scalar_select %p562_p11, 1, 0 }
  0x11   : > { %s672_s25 = scalar_select %p566_p12, 1, 0 }
  0x12   : > { %s337_s27 = sshll.u32 %s486_s15, 7  ;;  %s325_s28 = sshll.u32 %s137_s26, 3 }
  0x13   : > { %s575_s4 = scalar_lea.hbm %s663_s0, %s337_s27  ;;  %s141_s5 = scalar_lea.vmem [#allocation2], %s325_s28 }
  0x14   : > { %s149_s6 = sshll.u32 %s141_s5, 4  ;;  %p579_p13 = pnand %p351_p10, %p551_p5  ;;  %s583_s6 = int_to_ptr.vmem [resolvable:$true] %s149_s6 }
  0x15   : > { %s138_s8 = scalar_lea.sflag [#allocation3], %s137_s26  ;;  %s394_s9 = scalar_lea.hbm %s575_s4, 128 }
  0x16   : > { %p395_p2 = scmp.ne.s32.totalorder %s575_s4, %s394_s9  ;;  %p396_p3 = pneg %p579_p13 }
  0x17   : > { %s399_s17 = scalar_lea.hbm %s663_s0, 256  ;;  %p400_p5 = scmp.lt.s32.totalorder %s575_s4, %s663_s0 }
  0x18   : > { %p397_p4 = pnand %p396_p3, %p395_p2  ;;  %p401_p8 = scmp.lt.s32.totalorder %s399_s17, %s394_s9 }
  0x1a   : > { %p398_p7 = pneg %p397_p4  ;;  %p402_p10 = por %p401_p8, %p400_p5 }
  0x1c   : > { %p403_p9 = pnand %p402_p10, %p398_p7 }
  0x1e   : > { %406 = shalt.err (!%p403_p9)
}
  0x1f   : > { %s407_s22 = scalar_lea.vmem %s583_s6, 128  ;;  %s488_s26 = smov [#allocation2]  }
  0x20   : > { %p408_p0 = scmp.ne.s32.totalorder %s583_s6, %s407_s22  ;;  %s412_s27 = sshll.u32 %s488_s26, 4  ;;  %s413_s27 = int_to_ptr.vmem [resolvable:$false] %s412_s27 }
  0x21   : > { %s414_s28 = scalar_lea.vmem %s413_s27, 256  ;;  %p415_p4 = scmp.lt.s32.totalorder %s583_s6, %s413_s27 }
  0x22   : > { %p410_p1 = pnand %p408_p0, %p396_p3  ;;  %p416_p12 = scmp.lt.s32.totalorder %s414_s28, %s407_s22 }
  0x24   : > { %p411_p2 = pneg %p410_p1  ;;  %p417_p11 = por %p416_p12, %p415_p4 }
  0x26   : > { %p418_p6 = pnand %p417_p11, %p411_p2 }
  0x28   : > { %421 = shalt.err (!%p418_p6)
}
  0x29   : > { %346 = dma.hbm_to_vmem [thread:$0]  (!%p579_p13), %s575_s4, 128, %s583_s6, %s138_s8  }
  0x2a   : > { %p674_p9 = scmp.lt.s32.totalorder %s486_s15, 3  ;;  %p675_p7 = scmp.ge.s32.totalorder %s486_s15, 1 }
  0x2c   : > { %p155_p0 = pnand %p675_p7, %p674_p9 }
  0x2d   : > { %s610_s29 = sand.u32 (!%p155_p0), 1, %s478_s13   ;;  %p676_p6 = scmp.ne.s32.totalorder (!%p155_p0), %s670_s23, 0 }
  0x2e   : > { %158 = sbr.rel (%p155_p0) target bundleno = 514 (0x202), region = 32  ;;  %s329_s30 = sshll.u32 (!%p155_p0), %s610_s29, 3 }
  0x2f   : > { %s161_s5 = scalar_lea.sflag (!%p155_p0), [#allocation3], %s610_s29  ;;  %s164_s7 = scalar_lea.vmem (!%p155_p0), [#allocation2], %s329_s30 }
  0x33   : > { %465 = dma.done.wait (%p676_p6), %s161_s5, 128  }
  0x34   : > { %467 = vsyncadd (%p676_p6), %s161_s5, 4294967168  ;;  %vm191_vm0 = vcmask 1043456   ;;  %v187_v0 = vld [vmem:[%s164_s7] sm:$0xff]  ;;  %v200_v5 = vlaneseq  ;;  %vm212_vm1 = vcmask 27648   ;;  %v489_v14 = vmov 0   ;;  %s338_s9 = sshll.u32 %s533_s16, 7 }
  0x35   : > { %v189_v1 = vcombine.high %v187_v0, %v187_v0  ;;  %v192_v2 = vsel %vm191_vm0, %v187_v0, 0.0  ;;  %v197_v10 = vld [vmem:[%s664_s1] sm:$0xf]  ;;  %387 = vset.pattern.permute.xlu1 %v489_v14  ;;  %388 = vset.pattern.permute.xlu0 %v489_v14  ;;  %v490_v22 = vmov 839922192   ;;  %s186_s10 = scalar_lea.vmem [#allocation5], %s329_s30  ;;  %s250_s20 = scalar_lea.hbm %s666_s3, %s338_s9 }
  0x36   : > { %v201_v6 = vand.u32 127, %v200_v5  ;;  %v203_v7 = vshrl.u32 %v200_v5, 7  ;;  %v198_v15 = vld [vmem:[%s665_s2] sm:$0xf]  ;;  %v228_v23 = vunpack.c.l.s4 %v490_v22  ;;  %s252_s11 = sshll.u32 %s186_s10, 4  ;;  %s238_s22 = scalar_lea.sflag [#allocation4], %s610_s29  ;;  %s253_s11 = int_to_ptr.vmem [resolvable:$true] %s252_s11 }
  0x37   : > { %v193_v3 = vsel %vm191_vm0, %v189_v1, 0.0  ;;  %s422_s26 = scalar_lea.vmem %s253_s11, 128  ;;  %p677_p12 = scmp.ne.s32.totalorder %s671_s24, 0 }
  0x38   : > { %v194_v4 = vadd.f32 %v193_v3, %v192_v2  ;;  %v204_v8 = vsub.s32 %v201_v6, %v203_v7  ;;  %v229_v24 = vunpack.c.0.s8 %v228_v23  ;;  %p423_p11 = scmp.ne.s32.totalorder %s253_s11, %s422_s26  ;;  %s491_s27 = smov [#allocation5]  }
  0x39   : > { %s426_s28 = sshll.u32 %s491_s27, 4  ;;  %s427_s28 = int_to_ptr.vmem [resolvable:$false] %s426_s28 }
  0x3a   : > { %195 = vadd.xlane.f32.xlu0 %v194_v4  ;;  %v232_v25 = vsub.s32 %v229_v24, %v203_v7  ;;  %p424_p13 = pnand %p423_p11, %p677_p12  ;;  %s428_s16 = scalar_lea.vmem %s427_s28, 256 }
  0x3b   : > { %p429_p3 = scmp.lt.s32.totalorder %s253_s11, %s427_s28  ;;  %p430_p5 = scmp.lt.s32.totalorder %s428_s16, %s422_s26 }
  0x3c   : > { %p425_p1 = pneg %p424_p13 }
  0x3d   : > { %p431_p8 = por %p430_p5, %p429_p3 }
  0x3f   : > { %p432_p10 = pnand %p431_p8, %p425_p1 }
  0xc3   : > { %v196_v9 = vpop.xlane.xlu0 %195 }
  0xc4   : > { %v205_v11 = vrot.slane %v196_v9, %v204_v8 }
  0xc6   : > { %v211_v12 = vmul.f32 %v205_v11, %v197_v10 }
  0xc8   : > { %v213_v13 = vsel %vm212_vm1, %v211_v12, 0.0 }
  0xc9   : > { %214 = vadd.xlane.f32.xlu0 %v213_v13 }
 0x152   : > { %v215_v16 = vpop.xlane.xlu0 %214 }
 0x153   : > { %v216_v17 = vadd.f32 %v215_v16, %v198_v15 }
 0x155   : > { %v331_v18 = vmul.f32 -1.442695, %v216_v17 }
 0x157   : > { %390 = vpow2.f32 %v331_v18 }
 0x164   : > { %v391_v19 = vpop.eup %390 }
 0x165   : > { %v220_v20 = vadd.f32 1.0, %v391_v19 }
 0x167   : > { %392 = vrcp.f32 %v220_v20 }
 0x174   : > { %v393_v21 = vpop.eup %392 }
 0x175   : > { %225 = vperm.xlu1 %387, %v393_v21  }
 0x1f0   : > { %v226_v26 = vpop.permute.xlu1 %225 }
 0x1f1   : > { %v233_v27 = vrot.slane %v226_v26, %v232_v25 }
 0x1f3   : > { %v235_v28 = vmul.f32 %v233_v27, %v187_v0 }
 0x1f5   : > { %236 = vst [vmem:[%s186_s10] sm:$0xff] %v235_v28 }
 0x1f6   : > { %435 = shalt.err (!%p432_p10)
}
 0x1f7   : > { %s436_s30 = scalar_lea.hbm %s250_s20, 128  ;;  %s440_s7 = scalar_lea.hbm %s666_s3, 256 }
 0x1f8   : > { %p437_p2 = scmp.ne.s32.totalorder %s250_s20, %s436_s30  ;;  %p441_p7 = scmp.lt.s32.totalorder %s250_s20, %s666_s3 }
 0x1f9   : > { %p442_p0 = scmp.lt.s32.totalorder %s440_s7, %s436_s30 }
 0x1fa   : > { %p438_p4 = pnand %p437_p2, %p677_p12 }
 0x1fb   : > { %p443_p6 = por %p442_p0, %p441_p7 }
 0x1fc   : > { %p439_p9 = pneg %p438_p4 }
 0x1fe   : > { %p444_p11 = pnand %p443_p6, %p439_p9 }
 0x200   : > { %447 = shalt.err (!%p444_p11)
}
 0x201   : > { %341 = dma.vmem_to_hbm [thread:$0]  (%p677_p12), %s253_s11, 128, %s250_s20, %s238_s22  }
 0x202 PF: > { %s264_s23 = sand.u32 1, %s474_s12   ;;  %p678_p13 = scmp.ne.s32.totalorder %s672_s25, 0 }
 0x203   : > { %p679_p1 = scmp.ge.s32.totalorder %s486_s15, 2  ;;  %s265_s8 = scalar_lea.sflag [#allocation4], %s264_s23 }
 0x205   : > { %p348_p3 = pnand %p679_p1, %p678_p13 }
 0x207   : > { %p349_p5 = pneg %p348_p3 }
 0x209   : > { %469 = dma.done.wait (%p349_p5), %s265_s8, 128  }
 0x20a   : > { %471 = vsyncadd (%p349_p5), %s265_s8, 4294967168  ;;  %p16_p8 = scmp.ge.s32.totalorder %s537_s18, 4   ;;  %s680_s12 = smov %s478_s13 }
 0x20b   : > { %s681_s13 = smov %s482_s14  ;;  %s682_s14 = smov %s549_s21 }
 0x20c   : > { %s683_s15 = smov %s537_s18  ;;  %18 = sbr.rel (!%p16_p8) target bundleno = 5 (0x5), region = 77 }
 0x211   :  { %270 = vsyncpa [#allocation3], 1 }
 0x212   :  { %272 = vsyncpa [#allocation3 + $0x1], 1 }
 0x213   :  { %273 = vsyncpa [#allocation4], 1 }
 0x214   :  { %275 = vsyncpa [#allocation4 + $0x1], 1 }

</bundles_post_ra>
